<compile_context>
chip_gen: v7x
topology: tpu7x:2x2x1
jax: 0.10.0
libtpu: 0.0.40
codegen_flags: <defaults>
</compile_context>

<pallas_src>
import numpy as np
import jax
import jax.numpy as jnp
from jax import lax
from jax.experimental import pallas as pl
from jax.experimental.pallas import tpu as pltpu

ROW_TILE = 2048          # max rows per grid step (multiple of 16)
VMEM_BUDGET = 24 << 20   # budget for the double-buffered input streams


def _round_up(x, m):
    return -(-x // m) * m


# ----------------------------------------------------------------------------
# Pallas kernel: fused masked-CE + smoothing-KL (w·p part) partial sums.
# ----------------------------------------------------------------------------
def _casls_kernel(logits_ref, mrow_ref, side_ref, out_ref):
    i = pl.program_id(1)

    @pl.when(i == 0)
    def _():
        out_ref[...] = jnp.zeros_like(out_ref)

    logits = logits_ref[...].astype(jnp.float32)          # (TM, C) cast in-kernel
    mrow = mrow_ref[...].astype(jnp.float32)              # (TM, C) raw matric rows
    side = side_ref[...]                                  # (TM, 4) f32
    tgt_f = side[:, 0:1]                                  # target id as exact float
    ce_w = side[:, 1:2]                                   # (tgt != pad) / n_valid
    s_kl = side[:, 2:3]                                   # kl_scale * smoothing
    src_kl = side[:, 3:4]                                 # kl_scale * src (scatter value)

    # softmax / log-sum-exp over the class (lane) axis
    m = jnp.max(logits, axis=-1, keepdims=True)
    ex = jnp.exp(logits - m)
    sum_ex = jnp.sum(ex, axis=-1, keepdims=True)
    inv = pl.reciprocal(sum_ex, approx=True)              # EUP, off the VALU path
    lse = m + jnp.log(sum_ex)

    col = lax.broadcasted_iota(jnp.int32, logits.shape, 1).astype(jnp.float32)
    onehot = col == tgt_f                                  # exact: small ints in f32

    # kl_scale-scaled smoothing target distribution (xlogy(w,w) handled on host)
    w = jnp.where(onehot, src_kl, s_kl * mrow)
    # CE lives only on the target column
    ce_elt = jnp.where(onehot, ce_w * (lse - logits), 0.0)

    # padded rows have logits=0, mrow=0, side=0 -> every term is exactly zero
    elt = ce_elt - w * (ex * inv)                          # (TM, C)
    out_ref[...] += jnp.sum(elt, axis=0, keepdims=True)    # (1, C) per-lane partials


def _fused_partial_sums(logits_flat, m_rows, side):
    """logits (M,C) any float; m_rows (M,C) bf16; side (M,4) f32 -> scalar f32."""
    M, C = logits_flat.shape
    cpad = _round_up(C, 128)

    # VMEM-aware tile sizing (double-buffered: logits + bf16 rows + narrow side)
    bytes_per_row = cpad * (logits_flat.dtype.itemsize + m_rows.dtype.itemsize) + 128 * 4
    tm_cap = max(16, (VMEM_BUDGET // (2 * bytes_per_row)) // 16 * 16)
    tm = min(ROW_TILE, tm_cap, _round_up(M, 8))
    m_pad = _round_up(M, tm)

    pad = m_pad - M
    if pad:
        # padded rows: logits=0, m_rows=0, side=0 (tgt=0, ce_w=0, s'=0, src'=0)
        # -> both the CE and the KL contributions of padded rows are exactly 0.
        logits_flat = jnp.pad(logits_flat, ((0, pad), (0, 0)))
        m_rows = jnp.pad(m_rows, ((0, pad), (0, 0)))
        side = jnp.pad(side, ((0, pad), (0, 0)))

    n_tiles = m_pad // tm
    # Use the megacore "parallel" chunk axis only when it divides the tile count:
    # single-TC chips (v5e/v6e) never pay padding for it, v7x still gets 2 chunks.
    n_chunks = 2 if (n_tiles >= 2 and n_tiles % 2 == 0) else 1
    tiles_per_chunk = n_tiles // n_chunks

    row_map = lambda c, i: (c * tiles_per_chunk + i, 0)

    need = 2 * tm * bytes_per_row + cpad * 4 + (1 << 20)
    vmem_limit = int(min(max(2 * need, 16 << 20), 48 << 20))

    partials = pl.pallas_call(
        _casls_kernel,
        out_shape=jax.ShapeDtypeStruct((n_chunks, 1, C), jnp.float32),
        grid=(n_chunks, tiles_per_chunk),
        in_specs=[
            pl.BlockSpec((tm, C), row_map),    # logits (native dtype, cast in-kernel)
            pl.BlockSpec((tm, C), row_map),    # gathered matric rows (bf16)
            pl.BlockSpec((tm, 4), row_map),    # merged per-row scalars
        ],
        out_specs=pl.BlockSpec((None, 1, C), lambda c, i: (c, 0, 0)),
        compiler_params=pltpu.CompilerParams(
            dimension_semantics=("parallel", "arbitrary"),
            vmem_limit_bytes=vmem_limit),
    )(logits_flat, m_rows, side)

    return jnp.sum(partials)


# ----------------------------------------------------------------------------
# Module wrapper (host/JAX glue + Pallas numeric core).
# ----------------------------------------------------------------------------
class CASLSRobustSmoothLoss:
    def __init__(self, ignore_index, matric, alpha=0.0, normalize_length=True,
                 device=None, **kwargs):
        self.padding_idx = ignore_index
        self.confidence = 1.0 - alpha
        self.smoothing = alpha
        self.matric = jnp.asarray(matric, jnp.float32)[:-1, :-1, :-1]   # (C, C, C)
        self.normalize_length = normalize_length
        self.device = device

        mt = self.matric
        C = mt.shape[-1]
        # tiny per-(forth, target) scalar tables so the logits-independent
        # xlogy(w, w) part of the KL never needs an (M, C) temporary
        self._row_sum = jnp.sum(mt, axis=-1)                                   # B[f,t]
        self._row_xlogy = jnp.sum(
            jnp.where(mt > 0, mt * jnp.log(jnp.maximum(mt, 1e-38)), 0.0), -1)  # A[f,t]
        idx = jnp.arange(C)
        self._diag = mt[:, idx, idx]                                           # m[f,t,t]
        self._diag_xlogy = jnp.where(
            self._diag > 0,
            self._diag * jnp.log(jnp.maximum(self._diag, 1e-38)), 0.0)
        # pre-cast (C*C, C) row table so the per-row gather streams bf16 (half bytes)
        self._rows_bf16 = jnp.reshape(mt, (C * C, C)).astype(jnp.bfloat16)
        self._C = C

    def forward(self, input, target, _, labels):
        B, T, C = input.shape
        M = B * T

        length = jnp.asarray([len(l) for l in labels], jnp.float32) + 1.0        # (B,)
        smoothing = 1.0 - jnp.power(1.0 - self.smoothing, 1.0 / length)           # (B,)
        s = jnp.repeat(smoothing, T)                                              # (M,)

        tgt = target.reshape(M).astype(jnp.int32)
        forth = jnp.concatenate(
            [jnp.zeros((B, 1), jnp.int32), target[:, :-1].astype(jnp.int32)],
            axis=1).reshape(M)

        # per-row scalars gathered from tiny (C,C) tables (M scalars each)
        b_ft = self._row_sum[forth, tgt]
        a_ft = self._row_xlogy[forth, tgt]
        d_ft = self._diag[forth, tgt]
        dl_ft = self._diag_xlogy[forth, tgt]
        src = 1.0 - s * b_ft                                                      # scatter value

        # logits-independent part of the KL: sum_c xlogy(w, w) per row
        # (uses the w > 0 convention: xlogy(w,w)=0 for w <= 0, matching the reference)
        s_log_s = jnp.where(s > 0, s * jnp.log(jnp.maximum(s, 1e-38)), 0.0)
        xlogy_rows = (s_log_s * (b_ft - d_ft) + s * (a_ft - dl_ft)
                      + jnp.where(src > 0, src * jnp.log(jnp.maximum(src, 1e-38)), 0.0))
        xlogy_sum = jnp.sum(xlogy_rows)

        valid = (tgt != self.padding_idx).astype(jnp.float32)
        n_valid = jnp.maximum(jnp.sum(valid), 1.0)
        ce_w = valid / n_valid

        kl_scale = 1.0 / float(M * C)                     # KLDivLoss 'mean' = elementwise mean
        side = jnp.stack(
            [tgt.astype(jnp.float32), ce_w, kl_scale * s, kl_scale * src],
            axis=-1).astype(jnp.float32)                                          # (M, 4)

        # TODO(synk): the per-row matric[forth, tgt, :] gather (data-dependent row
        # gather) has no clean Pallas/Mosaic equivalent; it stays in XLA but is now
        # streamed as raw bf16 rows (half the bytes of the old f32 w_rows stream).
        m_rows = jnp.take(self._rows_bf16, forth * self._C + tgt, axis=0)          # (M, C)

        logits_flat = input.reshape(M, C)                 # no wrapper cast; kernel casts
        kernel_sum = _fused_partial_sums(logits_flat, m_rows, side)
        return kernel_sum + kl_scale * xlogy_sum


# ----------------------------------------------------------------------------
# Pure numpy (f64) reference mirroring the PyTorch module exactly.
# ----------------------------------------------------------------------------
def _numpy_reference(logits, target, labels, matric_sliced, alpha, padding_idx):
    x = np.asarray(logits, np.float64)
    t2d = np.asarray(target)
    B, T, C = x.shape
    xf = x.reshape(-1, C)
    t = t2d.reshape(-1)

    # CrossEntropyLoss(ignore_index), reduction='mean' over valid rows
    m = xf.max(axis=-1, keepdims=True)
    lse = (m + np.log(np.exp(xf - m).sum(axis=-1, keepdims=True)))[:, 0]
    corr = xf[np.arange(xf.shape[0]), t]
    valid = t != padding_idx
    ce = ((lse - corr) * valid).sum() / max(int(valid.sum()), 1)

    # KLDivLoss(reduction='mean')(softmax(x), w)
    f2d = np.zeros_like(t2d)
    f2d[:, 1:] = t2d[:, :-1]
    forth = f2d.reshape(-1)
    p = np.exp(xf - m)
    p /= p.sum(axis=-1, keepdims=True)
    length = np.asarray([len(s) for s in labels], np.float64) + 1.0
    smoothing = np.repeat(1.0 - (1.0 - alpha) ** (1.0 / length), T)
    mat = np.asarray(matric_sliced, np.float64)
    w = smoothing[:, None] * mat[forth, t, :]
    srcv = 1.0 - w.sum(axis=-1)
    w[np.arange(w.shape[0]), t] = srcv
    wpos = w > 0
    xlogy = np.where(wpos, w * np.log(np.where(wpos, w, 1.0)), 0.0)
    kl = (xlogy - w * p).sum() / w.size
    return float(ce + kl)


def _run_case(key, B, T, C, labels, alpha, padding_idx):
    k1, k2, k3 = jax.random.split(key, 3)
    logits = jax.random.normal(k1, (B, T, C), dtype=jnp.float32)
    raw_t = jax.random.randint(k2, (B, T), 1, C)
    lens = jnp.asarray([len(s) + 1 for s in labels])[:, None]
    target = jnp.where(jnp.arange(T)[None, :] < lens, raw_t, padding_idx).astype(jnp.int32)

    m_full = jax.random.uniform(k3, (C + 1, C + 1, C + 1), dtype=jnp.float32)
    m_full = m_full / jnp.sum(m_full, axis=-1, keepdims=True)

    mod = CASLSRobustSmoothLoss(padding_idx, m_full, alpha=alpha)
    loss = jax.block_until_ready(mod.forward(logits, target, None, labels))

    ref = _numpy_reference(logits, target, labels,
                           np.asarray(m_full)[:-1, :-1, :-1], alpha, padding_idx)
    assert abs(float(loss) - ref) < 1e-4 * max(1.0, abs(ref)), (float(loss), ref)
    return float(loss)


if __name__ == "__main__":
    key = jax.random.PRNGKey(0)
    k_small, k_mid, k_big = jax.random.split(key, 3)

    # tiny case: single tile, single chunk (M=16, C=16)
    _run_case(k_small, B=2, T=8, C=16, labels=["hello", "hi"], alpha=0.1, padding_idx=0)

    # mid case: one full-size tile, no padding (M = 48*24 = 1152, C = 39)
    labels_mid = ["x" * ((i % 7) + 1) for i in range(48)]
    _run_case(k_mid, B=48, T=24, C=39, labels=labels_mid, alpha=0.2, padding_idx=0)

    # big case: multi-tile accumulation + 2 parallel chunks + row padding
    # (M = 68*96 = 6528 -> padded to 8192, grid = (2 chunks, 2 tiles each))
    labels_big = ["x" * ((i % 7) + 1) for i in range(68)]
    _run_case(k_big, B=68, T=96, C=39, labels=labels_big, alpha=0.2, padding_idx=0)

    print("KERNEL_OK")
</pallas_src>

<mosaic_0001>
module attributes {stable_mosaic.version = 11 : i64} {
  func.func @_casls_kernel(%arg0: i32, %arg1: i32, %arg2: memref<16x16xf32, #tpu.memory_space<vmem>>, %arg3: memref<16x16xbf16, #tpu.memory_space<vmem>>, %arg4: memref<16x4xf32, #tpu.memory_space<vmem>>, %arg5: memref<1x1x16xf32, #tpu.memory_space<vmem>>) attributes {dimension_semantics = [#tpu.dimension_semantics<parallel>, #tpu.dimension_semantics<arbitrary>], iteration_bounds = array<i64: 1, 1>, scalar_prefetch = 0 : i64, scratch_operands = 0 : i64, tpu.core_type = #tpu.core_type<tc>, window_params = [{transform_indices = @transform_0, window_bounds = array<i64: 16, 16>}, {transform_indices = @transform_1, window_bounds = array<i64: 16, 16>}, {transform_indices = @transform_2, window_bounds = array<i64: 16, 4>}, {transform_indices = @transform_3, window_bounds = array<i64: 1, 1, 16>}]} {
    %c0_i32 = arith.constant 0 : i32
    %0 = arith.cmpi eq, %arg1, %c0_i32 : i32
    %1 = arith.extui %0 : i1 to i32
    %c0_i32_0 = arith.constant 0 : i32
    %2 = arith.cmpi ne, %1, %c0_i32_0 : i32
    scf.if %2 {
      %cst_15 = arith.constant 0.000000e+00 : f32
      %48 = vector.broadcast %cst_15 : f32 to vector<1x16xf32>
      %c0_16 = arith.constant 0 : index
      %c0_17 = arith.constant 0 : index
      %c0_18 = arith.constant 0 : index
      %49 = vector.load %arg5[%c0_16, %c0_17, %c0_18] : memref<1x1x16xf32, #tpu.memory_space<vmem>>, vector<1x1x16xf32>
      %50 = vector.shape_cast %49 : vector<1x1x16xf32> to vector<1x16xf32>
      %51 = vector.shape_cast %48 : vector<1x16xf32> to vector<1x1x16xf32>
      tpu.vector_store %arg5[%c0_16, %c0_17, %c0_18], %51 {strides = array<i32>} : memref<1x1x16xf32, #tpu.memory_space<vmem>>, vector<1x1x16xf32>,
    } else {
    }
    %c0 = arith.constant 0 : index
    %c0_1 = arith.constant 0 : index
    %3 = vector.load %arg2[%c0, %c0_1] : memref<16x16xf32, #tpu.memory_space<vmem>>, vector<16x16xf32>
    %c0_2 = arith.constant 0 : index
    %c0_3 = arith.constant 0 : index
    %4 = vector.load %arg3[%c0_2, %c0_3] : memref<16x16xbf16, #tpu.memory_space<vmem>>, vector<16x16xbf16>
    %5 = arith.extf %4 : vector<16x16xbf16> to vector<16x16xf32>
    %c0_4 = arith.constant 0 : index
    %c0_5 = arith.constant 0 : index
    %6 = vector.load %arg4[%c0_4, %c0_5] : memref<16x4xf32, #tpu.memory_space<vmem>>, vector<16x4xf32>
    %7 = vector.extract_strided_slice %6 {offsets = [0, 0], sizes = [16, 1], strides = [1, 1]} : vector<16x4xf32> to vector<16x1xf32>
    %8 = vector.extract_strided_slice %6 {offsets = [0, 1], sizes = [16, 1], strides = [1, 1]} : vector<16x4xf32> to vector<16x1xf32>
    %9 = vector.extract_strided_slice %6 {offsets = [0, 2], sizes = [16, 1], strides = [1, 1]} : vector<16x4xf32> to vector<16x1xf32>
    %10 = vector.extract_strided_slice %6 {offsets = [0, 3], sizes = [16, 1], strides = [1, 1]} : vector<16x4xf32> to vector<16x1xf32>
    %cst = arith.constant dense<0xFF800000> : vector<16xf32>
    %11 = vector.multi_reduction <maximumf>, %3, %cst [1] : vector<16x16xf32> to vector<16xf32>
    %12 = vector.shape_cast %11 : vector<16xf32> to vector<16x1xf32>
    %13 = vector.broadcast %12 : vector<16x1xf32> to vector<16x16xf32>
    %14 = arith.subf %3, %13 : vector<16x16xf32>
    %15 = math.exp %14 : vector<16x16xf32>
    %cst_6 = arith.constant dense<0.000000e+00> : vector<16xf32>
    %16 = vector.multi_reduction <add>, %15, %cst_6 [1] : vector<16x16xf32> to vector<16xf32>
    %17 = vector.shape_cast %16 : vector<16xf32> to vector<16x1xf32>
    %18 = tpu.reciprocal %17 {approx = true} : vector<16x1xf32> -> vector<16x1xf32>
    %19 = math.log %17 : vector<16x1xf32>
    %20 = arith.addf %12, %19 : vector<16x1xf32>
    %21 = tpu.iota {dimensions = array<i32: 1>} : vector<16x16xi32>
    %22 = arith.sitofp %21 : vector<16x16xi32> to vector<16x16xf32>
    %23 = vector.broadcast %7 : vector<16x1xf32> to vector<16x16xf32>
    %24 = arith.cmpf oeq, %22, %23 : vector<16x16xf32>
    %25 = vector.broadcast %9 : vector<16x1xf32> to vector<16x16xf32>
    %26 = arith.mulf %25, %5 : vector<16x16xf32>
    %27 = vector.shape_cast %10 : vector<16x1xf32> to vector<16x1xf32>
    %28 = vector.broadcast %27 : vector<16x1xf32> to vector<16x16xf32>
    %29 = arith.select %24, %28, %26 : vector<16x16xi1>, vector<16x16xf32>
    %30 = vector.broadcast %20 : vector<16x1xf32> to vector<16x16xf32>
    %31 = arith.subf %30, %3 : vector<16x16xf32>
    %32 = vector.broadcast %8 : vector<16x1xf32> to vector<16x16xf32>
    %33 = arith.mulf %32, %31 : vector<16x16xf32>
    %cst_7 = arith.constant 0.000000e+00 : f32
    %34 = vector.broadcast %cst_7 : f32 to vector<16x16xf32>
    %35 = arith.select %24, %33, %34 : vector<16x16xi1>, vector<16x16xf32>
    %36 = vector.broadcast %18 : vector<16x1xf32> to vector<16x16xf32>
    %37 = arith.mulf %15, %36 : vector<16x16xf32>
    %38 = arith.mulf %29, %37 : vector<16x16xf32>
    %39 = arith.subf %35, %38 : vector<16x16xf32>
    %c0_8 = arith.constant 0 : index
    %c0_9 = arith.constant 0 : index
    %c0_10 = arith.constant 0 : index
    %40 = vector.load %arg5[%c0_8, %c0_9, %c0_10] : memref<1x1x16xf32, #tpu.memory_space<vmem>>, vector<1x1x16xf32>
    %41 = vector.shape_cast %40 : vector<1x1x16xf32> to vector<1x16xf32>
    %cst_11 = arith.constant dense<0.000000e+00> : vector<16xf32>
    %42 = vector.multi_reduction <add>, %39, %cst_11 [0] : vector<16x16xf32> to vector<16xf32>
    %43 = vector.shape_cast %42 : vector<16xf32> to vector<1x16xf32>
    %44 = arith.addf %41, %43 : vector<1x16xf32>
    %c0_12 = arith.constant 0 : index
    %c0_13 = arith.constant 0 : index
    %c0_14 = arith.constant 0 : index
    %45 = vector.load %arg5[%c0_12, %c0_13, %c0_14] : memref<1x1x16xf32, #tpu.memory_space<vmem>>, vector<1x1x16xf32>
    %46 = vector.shape_cast %45 : vector<1x1x16xf32> to vector<1x16xf32>
    %47 = vector.shape_cast %44 : vector<1x16xf32> to vector<1x1x16xf32>
    tpu.vector_store %arg5[%c0_12, %c0_13, %c0_14], %47 {strides = array<i32>} : memref<1x1x16xf32, #tpu.memory_space<vmem>>, vector<1x1x16xf32>,
    return
  }
  func.func @transform_0(%arg0: i32, %arg1: i32) -> (i32, i32) {
    %c1_i32 = arith.constant 1 : i32
    %0 = arith.muli %arg0, %c1_i32 : i32
    %1 = arith.addi %0, %arg1 : i32
    %c0_i32 = arith.constant 0 : i32
    %c0_i32_0 = arith.constant 0 : i32
    return %1, %c0_i32 : i32, i32
  }
  func.func @transform_1(%arg0: i32, %arg1: i32) -> (i32, i32) {
    %c1_i32 = arith.constant 1 : i32
    %0 = arith.muli %arg0, %c1_i32 : i32
    %1 = arith.addi %0, %arg1 : i32
    %c0_i32 = arith.constant 0 : i32
    %c0_i32_0 = arith.constant 0 : i32
    return %1, %c0_i32 : i32, i32
  }
  func.func @transform_2(%arg0: i32, %arg1: i32) -> (i32, i32) {
    %c1_i32 = arith.constant 1 : i32
    %0 = arith.muli %arg0, %c1_i32 : i32
    %1 = arith.addi %0, %arg1 : i32
    %c0_i32 = arith.constant 0 : i32
    %c0_i32_0 = arith.constant 0 : i32
    return %1, %c0_i32 : i32, i32
  }
  func.func @transform_3(%arg0: i32, %arg1: i32) -> (i32, i32, i32) {
    %c0_i32 = arith.constant 0 : i32
    %c0_i32_0 = arith.constant 0 : i32
    %c0_i32_1 = arith.constant 0 : i32
    return %arg0, %c0_i32, %c0_i32_0 : i32, i32, i32
  }
}

</mosaic_0001>

<bundles_post_ra>
// kernel: tpu_custom_call.1
= control target key start
LH: loop header
LB: loop body
LE: loop exit
PB: predicated region body
PF: predicated region fallthrough
CT: control target
= control target key end

     0   :  { %8 = vsyncpa [#allocation3], 0  ;;  %s377_s0 = inlined_call_operand.vmem [shape: f32[16,16], index: 0, kind: input, shape index: {}]   ;;  %s378_s1 = inlined_call_operand.hbm [shape: bf16[16,16], index: 1, kind: input, shape index: {}]   ;;  %s379_s2 = inlined_call_operand.vmem [shape: f32[16,4], index: 2, kind: input, shape index: {}]   ;;  %s380_s3 = inlined_call_operand.hbm [shape: f32[1,1,16], index: 3, kind: output, shape index: {}]  }
   0x1   :  { %9 = vsyncpa [#allocation4], 0  ;;  %s294_s12 = smov [#allocation2]   ;;  %s246_s16 = scalar_lea.hbm %s378_s1, 128 }
   0x2   :  { %s29_s13 = sshll.u32 %s294_s12, 4  ;;  %p247_p0 = scmp.ne.s32.totalorder %s378_s1, %s246_s16  ;;  %s30_s13 = int_to_ptr.vmem [resolvable:$true] %s29_s13 }
   0x3   :  { %p250_p1 = scmp.lt.u32.totalorder %s246_s16, %s378_s1 }
   0x5   :  { %p252_p2 = pnand %p250_p1, %p247_p0 }
   0x7   :  { %255 = shalt.err (!%p252_p2)
}
   0x8   :  { %s256_s21 = scalar_lea.vmem %s30_s13, 128  ;;  %p261_p4 = scmp.lt.s32.totalorder %s30_s13, %s30_s13 }
   0x9   :  { %p257_p3 = scmp.ne.s32.totalorder %s30_s13, %s256_s21  ;;  %p262_p5 = scmp.lt.s32.totalorder %s256_s21, %s256_s21 }
   0xb   :  { %p263_p6 = por %p262_p5, %p261_p4 }
   0xd   :  { %p264_p7 = pnand %p263_p6, %p257_p3 }
   0xf   :  { %267 = shalt.err (!%p264_p7)
}
  0x10   :  { %s295_s22 = smov 64   ;;  %s296_s23 = smov 4  }
  0x11   :  { %35 = dma.hbm_to_vmem [thread:$0]  %s378_s1, 128, %s30_s13, [#allocation3], %s295_s22, %s295_s22, %s296_s23  }
  0x12   :  { %290 = dma.done.wait [#allocation3], 128  }
  0x13   :  { %291 = vsyncadd [#allocation3], 4294967168  ;;  %v297_v0 = vmov 2   ;;  %vm93_vm0 = vcmask 130048   ;;  %v338_v1 = vld [vmem:[%s377_s0] sm:$0xff]  ;;  %v343_v2 = vld [vmem:[%s377_s0 + $0x8] sm:$0xff]  ;;  %v120_v29 = vlaneseq }
  0x14   :  { %229 = vset.pattern.permute.xlu1 %v297_v0  ;;  %228 = vset.pattern.permute.xlu0 %v297_v0  ;;  %v92_v3 = vld [vmem:[%s379_s2 + $0x8] sm:$0xff]  ;;  %v94_v4 = vsel %vm93_vm0, %v338_v1, -inf  ;;  %v97_v5 = vsel %vm93_vm0, %v343_v2, -inf  ;;  %v91_v6 = vld [vmem:[%s379_s2] sm:$0xff]  ;;  %v298_v7 = vmov 0   ;;  %v299_v8 = vmov 3  }
  0x15   :  { %140 = vperm.xlu1 %229, %v92_v3   ;;  %95 = vmax.xlane.f32.xlu0 %v94_v4  ;;  %v300_v9 = vmov 1   ;;  %vm83_vm1 = vcmask 122880   ;;  %v301_v20 = vmov 0.0   ;;  %v216_v31 = vld [vmem:[#allocation2] sm:$0xff]   ;;  %v121_v32 = vand.u32 127, %v120_v29  ;;  %s302_s0 = smov [#allocation5]  }
  0x16   :  { %84 = vst.msk [vmem:[#allocation5] sm:$0x1] %vm83_vm1, %v301_v20  ;;  %v217_v33 = vunpack.c.l.bf16 %v216_v31  ;;  %v218_v37 = vunpack.c.h.bf16 %v216_v31  ;;  %s194_s2 = sshll.u32 %s302_s0, 4  ;;  %s195_s2 = int_to_ptr.vmem [resolvable:$true] %s194_s2 }
  0x17   :  { %v122_v40 = vcvt.s32.f32 %v121_v32  ;;  %s268_s6 = scalar_lea.vmem %s195_s2, 16  ;;  %s272_s7 = scalar_lea.vmem %s195_s2, 32 }
  0x18   :  { %p269_p8 = scmp.ne.s32.totalorder %s195_s2, %s268_s6  ;;  %p273_p9 = scmp.lt.s32.totalorder %s195_s2, %s195_s2 }
  0x19   :  { %230 = vset.pattern.permute.xlu1 %v298_v7  ;;  %98 = vmax.xlane.f32.xlu0 %v97_v5  ;;  %p274_p10 = scmp.lt.s32.totalorder %s272_s7, %s268_s6 }
  0x1a   :  { %125 = vperm.xlu1 %230, %v91_v6  }
  0x1b   :  { %p275_p11 = por %p274_p10, %p273_p9 }
  0x1d   :  { %p276_p12 = pnand %p275_p11, %p269_p8 }
  0x1e   :  { %130 = vperm.xlu1 %230, %v92_v3  }
  0x22   :  { %231 = vset.pattern.permute.xlu1 %v299_v8 }
  0x23   :  { %146 = vperm.xlu1 %231, %v91_v6  }
  0x27   :  { %150 = vperm.xlu1 %231, %v92_v3  }
  0x2b   :  { %232 = vset.pattern.permute.xlu1 %v300_v9 }
  0x2c   :  { %158 = vperm.xlu1 %232, %v91_v6  }
  0x2f   :  { %136 = vperm.xlu0 %228, %v91_v6  }
  0x33   :  { %233 = vset.pattern.permute.xlu0 %v300_v9 }
  0x94   :  { %v141_v21 = vpop.permute.xlu1 %140 }
  0x95   :  { %v144_v46 = vmul.f32 %v218_v37, %v141_v21 }
  0x99   :  { %v126_v22 = vpop.permute.xlu1 %125 }
  0x9a   :  { %vm133_vm2 = vcmp.eq.f32.partialorder %v122_v40, %v126_v22 }
  0x9d   :  { %v131_v23 = vpop.permute.xlu1 %130 }
  0x9e   :  { %vm134_vm3 = vcmp.eq.f32.partialorder %v122_v40, %v131_v23 }
  0xa2   :  { %v96_v10 = vpop.xlane.xlu0 %95  ;;  %v147_v24 = vpop.permute.xlu1 %146 }
  0xa3   :  { %v100_v11 = vsub.f32 %v338_v1, %v96_v10 }
  0xa5   :  { %v102_v12 = vmul.f32 1.442695, %v100_v11 }
  0xa6   :  { %v99_v13 = vpop.xlane.xlu0 %98  ;;  %v151_v25 = vpop.permute.xlu1 %150 }
  0xa7   :  { %234 = vpow2.f32 %v102_v12  ;;  %v101_v14 = vsub.f32 %v343_v2, %v99_v13  ;;  %v154_v55 = vsel %vm134_vm3, %v151_v25, %v144_v46 }
  0xa9   :  { %v104_v15 = vmul.f32 1.442695, %v101_v14 }
  0xab   :  { %236 = vpow2.f32 %v104_v15  ;;  %v159_v26 = vpop.permute.xlu1 %158 }
  0xae   :  { %v137_v35 = vpop.permute.xlu0 %136 }
  0xaf   :  { %v143_v42 = vmul.f32 %v217_v33, %v137_v35 }
  0xb1   :  { %v235_v16 = vpop.eup %234  ;;  %v153_v50 = vsel %vm133_vm2, %v147_v24, %v143_v42 }
  0xb2   :  { %v106_v17 = vsel %vm93_vm0, %v235_v16, 0.0 }
  0xb3   :  { %107 = vadd.xlane.f32.xlu1 %v106_v17 }
  0xb5   :  { %v237_v18 = vpop.eup %236 }
  0xb6   :  { %v109_v19 = vsel %vm93_vm0, %v237_v18, 0.0 }
  0xb7   :  { %110 = vadd.xlane.f32.xlu1 %v109_v19 }
  0xc8   :  { %162 = vperm.xlu1 %232, %v92_v3  }
 0x140   :  { %v108_v27 = vpop.xlane.xlu1 %107 }
 0x141   :  { %238 = vlog2.f32 %v108_v27 }
 0x142   :  { %240 = vrcp.f32 %v108_v27 }
 0x144   :  { %v111_v28 = vpop.xlane.xlu1 %110 }
 0x145   :  { %242 = vlog2.f32 %v111_v28 }
 0x146   :  { %244 = vrcp.f32 %v111_v28 }
 0x148   :  { %v163_v53 = vpop.permute.xlu1 %162 }
 0x14b   :  { %v239_v30 = vpop.eup %238 }
 0x14c   :  { %v115_v34 = vmul.f32 0.6931472, %v239_v30  ;;  %v241_v36 = vpop.eup %240 }
 0x14d   :  { %v169_v45 = vmul.f32 %v241_v36, %v235_v16 }
 0x14e   :  { %v118_v38 = vadd.f32 %v115_v34, %v96_v10 }
 0x14f   :  { %v243_v39 = vpop.eup %242  ;;  %v171_v54 = vmul.f32 %v169_v45, %v153_v50 }
 0x150   :  { %v245_v41 = vpop.eup %244  ;;  %v155_v43 = vsub.f32 %v118_v38, %v338_v1  ;;  %v117_v44 = vmul.f32 0.6931472, %v243_v39 }
 0x151   :  { %v170_v49 = vmul.f32 %v245_v41, %v237_v18 }
 0x152   :  { %v165_v47 = vmul.f32 %v159_v26, %v155_v43  ;;  %v119_v48 = vadd.f32 %v117_v44, %v99_v13 }
 0x153   :  { %v172_v57 = vmul.f32 %v170_v49, %v154_v55 }
 0x154   :  { %v156_v51 = vsub.f32 %v119_v48, %v343_v2  ;;  %v167_v52 = vsel %vm133_vm2, %v165_v47, 0.0  ;;  %v175_v2 = vld [vmem:[#allocation5] sm:$0x1] }
 0x155   :  { %v173_v58 = vsub.f32 %v167_v52, %v171_v54 }
 0x156   :  { %v166_v56 = vmul.f32 %v163_v53, %v156_v51 }
 0x157   :  { %v176_v61 = vsel %vm93_vm0, %v173_v58, 0.0 }
 0x158   :  { %v168_v59 = vsel %vm134_vm3, %v166_v56, 0.0 }
 0x159   :  { %v174_v60 = vsub.f32 %v168_v59, %v172_v57 }
 0x15b   :  { %v177_v62 = vsel %vm93_vm0, %v174_v60, 0.0 }
 0x15c   :  { %v178_v63 = vadd.f32 %v177_v62, %v176_v61 }
 0x15e   :  { %v179_v0 = vrot.slane %v178_v63, 4 }
 0x160   :  { %v180_v1 = vadd.f32 %v179_v0, %v178_v63 }
 0x162   :  { %v181_v3 = vrot.slane %v180_v1, 2 }
 0x164   :  { %v182_v4 = vadd.f32 %v181_v3, %v180_v1 }
 0x166   :  { %v183_v5 = vrot.slane %v182_v4, 1 }
 0x168   :  { %v184_v6 = vadd.f32 %v183_v5, %v182_v4 }
 0x16a   :  { %v185_v7 = vadd.f32 %v184_v6, %v175_v2 }
 0x16c   :  { %187 = vst.msk [vmem:[#allocation5] sm:$0x1] %vm83_vm1, %v185_v7 }
 0x16d   :  { %279 = shalt.err (!%p276_p12)
}
 0x16e   :  { %s280_s10 = scalar_lea.hbm %s380_s3, 16 }
 0x16f   :  { %p281_p13 = scmp.ne.s32.totalorder %s380_s3, %s280_s10  ;;  %p284_p0 = scmp.lt.u32.totalorder %s280_s10, %s380_s3 }
 0x171   :  { %p286_p1 = pnand %p284_p0, %p281_p13 }
 0x173   :  { %289 = shalt.err (!%p286_p1)
}
 0x174   :  { %197 = dma.vmem_to_hbm [thread:$0]  %s195_s2, 16, %s380_s3, [#allocation4]  }
 0x175   :  { %292 = dma.done.wait [#allocation4], 16  }
 0x176   :  { %293 = vsyncadd [#allocation4], 4294967280 }
 0x177   :  { %201 = vsyncpa [#allocation3], 1 }
 0x178   :  { %202 = vsyncpa [#allocation4], 1 }

</bundles_post_ra>
